<compile_context>
chip_gen: v7x
topology: tpu7x:2x2x1
jax: 0.10.0
libtpu: 0.0.40
codegen_flags: <defaults>
</compile_context>

<pallas_src>
import jax
import jax.numpy as jnp
from jax.experimental import pallas as pl
from jax.experimental.pallas import tpu as pltpu

BN_EPS = 1e-5
ROW_TILE = 256                      # pixels (N*H*W rows) per grid step; multiple of 8
VMEM_LIMIT = 32 * 1024 * 1024       # safe scoped-VMEM budget on v5e/v6e/v7x


def conv_stats_kernel(x_ref, w_ref, y_ref, stats_ref):
    """One row tile of the im2col conv + partial BN statistics.

    x_ref:     (ROW_TILE, 9*Cin)  im2col rows for this tile
    w_ref:     (9*Cin, Cp)        folded conv weights (Cp = Cout padded to mult. of 128)
    y_ref:     (ROW_TILE, Cp)     conv output tile (pre-BN), f32
    stats_ref: (1, 2, Cp)         this tile's [sum, sum-of-squares] over rows
    """
    y = jnp.dot(x_ref[...], w_ref[...], preferred_element_type=jnp.float32)
    y_ref[...] = y
    s = jnp.sum(y, axis=0, keepdims=True)          # (1, Cp)
    ss = jnp.sum(y * y, axis=0, keepdims=True)     # (1, Cp)
    stats_ref[...] = jnp.concatenate([s, ss], axis=0).reshape(1, 2, y.shape[-1])


def bn_relu_kernel(y_ref, scale_ref, shift_ref, o_ref):
    """Fused BN apply + ReLU: one FMA + max per element, lane-dense stores."""
    o_ref[...] = jnp.maximum(y_ref[...] * scale_ref[...] + shift_ref[...], 0.0)


def conv_block(x_nchw, w_oihw, gamma, beta, *, row_tile=ROW_TILE):
    """Forward pass matching ConvBlock(in_ch, out_ch, normalization=True, act=True).

    x_nchw: (N, Cin, H, W) float32
    w_oihw: (Cout, Cin, 3, 3) float32 (PyTorch conv weight layout, bias=False)
    gamma, beta: (Cout,) BatchNorm affine parameters
    """
    N, Cin, H, W = x_nchw.shape
    Cout = w_oihw.shape[0]
    K = 9 * Cin
    Cp = ((Cout + 127) // 128) * 128          # lane-dense channel padding
    R = N * H * W
    num_tiles = pl.cdiv(R, row_tile)
    Rp = num_tiles * row_tile

    # ---- wrapper-side layout glue (cheap at these channel counts) ----------
    # im2col slab: (R, 9*Cin) with (kh, kw, cin) fastest-to-slowest matching
    # w_hwio.reshape(9*Cin, Cout).  This replaces the 9 in-kernel strided
    # reshapes with one deep matmul contraction.
    x_nhwc = jnp.transpose(x_nchw, (0, 2, 3, 1)).astype(jnp.float32)
    x_pad = jnp.pad(x_nhwc, ((0, 0), (1, 1), (1, 1), (0, 0)))
    patches = [x_pad[:, kh:kh + H, kw:kw + W, :]
               for kh in range(3) for kw in range(3)]
    x_cols = jnp.concatenate(patches, axis=-1).reshape(R, K)
    if Rp != R:
        # zero rows contribute 0 to sum/sumsq; stats below divide by the true R
        x_cols = jnp.pad(x_cols, ((0, Rp - R), (0, 0)))

    w_hwio = jnp.transpose(w_oihw, (2, 3, 1, 0)).astype(jnp.float32)   # (3,3,Cin,Cout)
    w_mat = jnp.pad(w_hwio.reshape(K, Cout), ((0, 0), (0, Cp - Cout)))

    # ---- pass 1: tiled conv matmul + per-tile partial BN stats -------------
    y_flat, stats = pl.pallas_call(
        conv_stats_kernel,
        out_shape=(jax.ShapeDtypeStruct((Rp, Cp), jnp.float32),
                   jax.ShapeDtypeStruct((num_tiles, 2, Cp), jnp.float32)),
        grid=(num_tiles,),
        in_specs=[
            pl.BlockSpec((row_tile, K), lambda i: (i, 0)),
            pl.BlockSpec((K, Cp), lambda i: (0, 0)),
        ],
        out_specs=(
            pl.BlockSpec((row_tile, Cp), lambda i: (i, 0)),
            pl.BlockSpec((1, 2, Cp), lambda i: (i, 0, 0)),
        ),
        compiler_params=pltpu.CompilerParams(
            dimension_semantics=("parallel",),          # v7x: shard tiles over 2 TCs
            vmem_limit_bytes=VMEM_LIMIT),
    )(x_cols, w_mat)

    # ---- tiny cross-tile reduction + BN folding (O(Cout) work, plain JAX) ---
    tot = jnp.sum(stats, axis=0)                        # (2, Cp)
    mean = tot[0] / R
    var = tot[1] / R - mean * mean                      # biased, as BN training
    inv_std = jax.lax.rsqrt(var + BN_EPS)
    gamma_p = jnp.pad(gamma.astype(jnp.float32), (0, Cp - Cout))
    beta_p = jnp.pad(beta.astype(jnp.float32), (0, Cp - Cout))
    scale = (gamma_p * inv_std).reshape(1, Cp)
    shift = (beta_p - mean * gamma_p * inv_std).reshape(1, Cp)

    # ---- pass 2: lane-dense fused (x*scale + shift) and ReLU ----------------
    out_flat = pl.pallas_call(
        bn_relu_kernel,
        out_shape=jax.ShapeDtypeStruct((Rp, Cp), jnp.float32),
        grid=(num_tiles,),
        in_specs=[
            pl.BlockSpec((row_tile, Cp), lambda i: (i, 0)),
            pl.BlockSpec((1, Cp), lambda i: (0, 0)),
            pl.BlockSpec((1, Cp), lambda i: (0, 0)),
        ],
        out_specs=pl.BlockSpec((row_tile, Cp), lambda i: (i, 0)),
        compiler_params=pltpu.CompilerParams(
            dimension_semantics=("parallel",),
            vmem_limit_bytes=VMEM_LIMIT),
    )(y_flat, scale, shift)

    # Back to PyTorch's NCHW convention.
    out = out_flat[:R, :Cout].reshape(N, H, W, Cout)
    return jnp.transpose(out, (0, 3, 1, 2))


def conv_block_reference(x_nchw, w_oihw, gamma, beta):
    """Pure-JAX reference (XLA conv) for correctness validation."""
    y = jax.lax.conv_general_dilated(
        x_nchw.astype(jnp.float32), w_oihw.astype(jnp.float32),
        window_strides=(1, 1), padding=((1, 1), (1, 1)),
        dimension_numbers=("NCHW", "OIHW", "NCHW"))
    mean = jnp.mean(y, axis=(0, 2, 3), keepdims=True)
    var = jnp.var(y, axis=(0, 2, 3), keepdims=True)     # biased, as in BN training
    y = (y - mean) * jax.lax.rsqrt(var + BN_EPS)
    y = y * gamma.reshape(1, -1, 1, 1) + beta.reshape(1, -1, 1, 1)
    return jnp.maximum(y, 0.0)


if __name__ == "__main__":
    key = jax.random.PRNGKey(0)
    k_x, k_w, k_g, k_b = jax.random.split(key, 4)

    N, Cin, Cout, H, W = 2, 4, 8, 16, 16

    x = jax.random.normal(k_x, (N, Cin, H, W), dtype=jnp.float32)
    # Conv2d weight (out_ch, in_ch, 3, 3); bias=False because normalization=True.
    w = jax.random.normal(k_w, (Cout, Cin, 3, 3), dtype=jnp.float32) * 0.1
    # BatchNorm2d affine params (deterministic, nontrivial).
    gamma = 1.0 + 0.1 * jax.random.normal(k_g, (Cout,), dtype=jnp.float32)
    beta = 0.1 * jax.random.normal(k_b, (Cout,), dtype=jnp.float32)

    out = jax.block_until_ready(conv_block(x, w, gamma, beta))
    ref = jax.block_until_ready(conv_block_reference(x, w, gamma, beta))

    assert out.shape == (N, Cout, H, W), out.shape
    max_err = float(jnp.max(jnp.abs(out - ref)))
    assert jnp.allclose(out, ref, atol=2e-4, rtol=2e-4), max_err

    print("KERNEL_OK")
</pallas_src>

<mosaic_0001>
module attributes {stable_mosaic.version = 11 : i64} {
  func.func @conv_stats_kernel(%arg0: i32, %arg1: memref<256x36xf32, #tpu.memory_space<vmem>>, %arg2: memref<36x128xf32, #tpu.memory_space<vmem>>, %arg3: memref<256x128xf32, #tpu.memory_space<vmem>>, %arg4: memref<1x2x128xf32, #tpu.memory_space<vmem>>) attributes {dimension_semantics = [#tpu.dimension_semantics<parallel>], iteration_bounds = array<i64: 2>, scalar_prefetch = 0 : i64, scratch_operands = 0 : i64, tpu.core_type = #tpu.core_type<tc>, window_params = [{transform_indices = @transform_0, window_bounds = array<i64: 256, 36>}, {pipeline_mode = #tpu.pipeline_mode<synchronous>, transform_indices = @transform_1, window_bounds = array<i64: 36, 128>}, {transform_indices = @transform_2, window_bounds = array<i64: 256, 128>}, {transform_indices = @transform_3, window_bounds = array<i64: 1, 2, 128>}]} {
    %c0 = arith.constant 0 : index
    %c0_0 = arith.constant 0 : index
    %0 = vector.load %arg1[%c0, %c0_0] : memref<256x36xf32, #tpu.memory_space<vmem>>, vector<256x36xf32>
    %c0_1 = arith.constant 0 : index
    %c0_2 = arith.constant 0 : index
    %1 = vector.load %arg2[%c0_1, %c0_2] : memref<36x128xf32, #tpu.memory_space<vmem>>, vector<36x128xf32>
    %cst = arith.constant dense<0.000000e+00> : vector<256x128xf32>
    %2 = tpu.matmul %0, %1, %cst {dimension_numbers = #tpu.dot_dimension_numbers<[1], [0], [0], [1], [0, 0, 1, 1], [], []>} : vector<256x36xf32>, vector<36x128xf32>, vector<256x128xf32> -> vector<256x128xf32>
    %c0_3 = arith.constant 0 : index
    %c0_4 = arith.constant 0 : index
    %3 = vector.load %arg3[%c0_3, %c0_4] : memref<256x128xf32, #tpu.memory_space<vmem>>, vector<256x128xf32>
    tpu.vector_store %arg3[%c0_3, %c0_4], %2 {strides = array<i32>} : memref<256x128xf32, #tpu.memory_space<vmem>>, vector<256x128xf32>,
    %cst_5 = arith.constant dense<0.000000e+00> : vector<128xf32>
    %4 = vector.multi_reduction <add>, %2, %cst_5 [0] : vector<256x128xf32> to vector<128xf32>
    %5 = vector.shape_cast %4 : vector<128xf32> to vector<1x128xf32>
    %6 = arith.mulf %2, %2 : vector<256x128xf32>
    %cst_6 = arith.constant dense<0.000000e+00> : vector<128xf32>
    %7 = vector.multi_reduction <add>, %6, %cst_6 [0] : vector<256x128xf32> to vector<128xf32>
    %8 = vector.shape_cast %7 : vector<128xf32> to vector<1x128xf32>
    %9 = tpu.concatenate %5, %8 in 0 : vector<1x128xf32>, vector<1x128xf32> -> vector<2x128xf32>
    %10 = vector.shape_cast %9 : vector<2x128xf32> to vector<1x2x128xf32>
    %c0_7 = arith.constant 0 : index
    %c0_8 = arith.constant 0 : index
    %c0_9 = arith.constant 0 : index
    %11 = vector.load %arg4[%c0_7, %c0_8, %c0_9] : memref<1x2x128xf32, #tpu.memory_space<vmem>>, vector<1x2x128xf32>
    tpu.vector_store %arg4[%c0_7, %c0_8, %c0_9], %10 {strides = array<i32>} : memref<1x2x128xf32, #tpu.memory_space<vmem>>, vector<1x2x128xf32>,
    return
  }
  func.func @transform_0(%arg0: i32) -> (i32, i32) {
    %c0_i32 = arith.constant 0 : i32
    %c0_i32_0 = arith.constant 0 : i32
    return %arg0, %c0_i32 : i32, i32
  }
  func.func @transform_1(%arg0: i32) -> (i32, i32) {
    %c0_i32 = arith.constant 0 : i32
    %c0_i32_0 = arith.constant 0 : i32
    %c0_i32_1 = arith.constant 0 : i32
    return %c0_i32, %c0_i32_0 : i32, i32
  }
  func.func @transform_2(%arg0: i32) -> (i32, i32) {
    %c0_i32 = arith.constant 0 : i32
    %c0_i32_0 = arith.constant 0 : i32
    return %arg0, %c0_i32 : i32, i32
  }
  func.func @transform_3(%arg0: i32) -> (i32, i32, i32) {
    %c0_i32 = arith.constant 0 : i32
    %c0_i32_0 = arith.constant 0 : i32
    %c0_i32_1 = arith.constant 0 : i32
    return %arg0, %c0_i32, %c0_i32_0 : i32, i32, i32
  }
}

</mosaic_0001>

<bundles_post_ra>
// kernel: tpu_custom_call.1
= control target key start
LH: loop header
LB: loop body
LE: loop exit
PB: predicated region body
PF: predicated region fallthrough
CT: control target
= control target key end

     0   :  { %9 = vsyncpa [#allocation3], 0  ;;  %s1489_s0 = inlined_call_operand.vmem [shape: f32[512,36], index: 0, kind: input, shape index: {}]   ;;  %s1490_s1 = inlined_call_operand.vmem [shape: f32[36,128], index: 1, kind: input, shape index: {}]   ;;  %s1491_s2 = inlined_call_operand.hbm [shape: f32[512,128], index: 2, kind: output, shape index: {0}]   ;;  %s1492_s3 = inlined_call_operand.hbm [shape: f32[2,2,128], index: 3, kind: output, shape index: {1}]  }
   0x1   :  { %11 = vsyncpa [#allocation3 + $0x1], 0 }
   0x2   :  { %12 = vsyncpa [#allocation5], 0 }
   0x3   :  { %14 = vsyncpa [#allocation5 + $0x1], 0  ;;  %s1137_s12 = smov 0   ;;  %s1139_s13 = smov 0  }
   0x4   :  { %s1141_s14 = smov 0   ;;  %s1143_s15 = smov 0  }
   0x5 LB: > { %s1158_s16 = sadd.s32 4294967295, %s1111_s15   ;;  %s813_s17 = sadd.s32 4294967294, %s1111_s15   ;;  %s1111_s15 = sphi %s1143_s15, %s1498_s15   ;;  %s1107_s14 = sphi %s1141_s14, %s1497_s14   ;;  %s1103_s13 = sphi %s1139_s13, %s1496_s13   ;;  %s1099_s12 = sphi %s1137_s12, %s1495_s12  }
   0x6   : > { %s1162_s18 = sadd.s32 1, %s1111_s15   ;;  %s74_s19 = sadd.s32 1, %s1107_s14 }
   0x7   : > { %s71_s20 = ssub.s32 %s1111_s15, %s1162_s18  ;;  %p84_p0 = scmp.ne.s32.totalorder %s1107_s14, %s1103_s13 }
   0x8   : > { %p72_p1 = scmp.eq.s32.totalorder %s71_s20, 0  ;;  %p85_p2 = scmp.eq.s32.totalorder %s1158_s16, 1 }
   0x9   : > { %p90_p3 = scmp.ne.s32.totalorder %s1103_s13, %s1099_s12  ;;  %p91_p4 = scmp.eq.s32.totalorder %s813_s17, 1 }
   0xa   : > { %s1173_s21 = scalar_select %p72_p1, %s1107_s14, %s74_s19  }
   0xb   : > { %p1175_p5 = por %p85_p2, %p84_p0  ;;  %p1179_p6 = por %p91_p4, %p90_p3 }
   0xc   : > { %p816_p7 = scmp.ge.s32.totalorder %s1111_s15, 1  ;;  %p147_p8 = scmp.lt.s32.totalorder %s1111_s15, 3 }
   0xe   : > { %p148_p9 = pnand %p816_p7, %p147_p8 }
   0xf   : > { %v215_v0 = vld [vmem:[%s1490_s1] sm:$0xff] (!%p148_p9)  ;;  %v216_v1 = vld [vmem:[%s1490_s1 + $0x8] sm:$0xff] (!%p148_p9)  ;;  %v217_v2 = vld [vmem:[%s1490_s1 + $0x10] sm:$0xff] (!%p148_p9)  ;;  %s1195_s30 = sshll.u32 (!%p148_p9), %s1158_s16, 5  ;;  %vm220_vm0 = vcmask (!%p148_p9), 293888   ;;  %vm317_vm1 = vcmask (!%p148_p9), 1043456  }
  0x10   : > { %151 = sbr.rel (%p148_p9) target bundleno = 346 (0x15a), region = 28  ;;  %v957_v3 = vpack.c.bf16 (!%p148_p9), %v216_v1, %v215_v0  ;;  %v218_v4 = vld [vmem:[%s1490_s1 + $0x18] sm:$0xff] (!%p148_p9)  ;;  %p177_p10 = scmp.lt.s32.totalorder (!%p148_p9), %s1195_s30, 63  ;;  %v219_v6 = vld [vmem:[%s1490_s1 + $0x20] sm:$0xf] (!%p148_p9) }
  0x11   : > { %v961_v5 = vpack.c.bf16 (!%p148_p9), %v218_v4, %v217_v2  ;;  %s1275_s19 = sand.u32 (!%p148_p9), 1, %s1103_s13   ;;  %s861_s25 = sshll.u32 (!%p148_p9), %s1158_s16, 12 }
  0x12   : > { %958 = vmatprep.subr.bf16.mxu0 (!%p148_p9), %v957_v3  ;;  %965 = vmatprep.subr.bf16.mxu1 (!%p148_p9), %v957_v3  ;;  %s817_s20 = sshll.u32 (!%p148_p9), %s1275_s19, 8  ;;  %s1356_s16 = scalar_lea.hbm (!%p148_p9), %s1491_s2, %s861_s25 }
  0x13   : > { %960 = vmatpush3.bf16.msra.mxu0 (!%p148_p9), %v957_v3  ;;  %968 = vmatpush3.bf16.msra.mxu1 (!%p148_p9), %v957_v3  ;;  %s1278_s24 = scalar_lea.vmem (!%p148_p9), [#allocation2], %s817_s20  ;;  %s688_s29 = scalar_lea.sflag (!%p148_p9), [#allocation3], %s1275_s19 }
  0x14   : > { %962 = vmatprep.subr.bf16.mxu0 (!%p148_p9), %v961_v5  ;;  %966 = vmatprep.subr.bf16.mxu1 (!%p148_p9), %v961_v5  ;;  %s706_s26 = sshll.u32 (!%p148_p9), %s1278_s24, 4  ;;  %s1113_s5 = smov (!%p148_p9), [#allocation2]   ;;  %s1358_s26 = int_to_ptr.vmem [resolvable:$true] %s706_s26 }
  0x15   : > { %s1017_s4 = scalar_lea.vmem (!%p148_p9), %s1358_s26, 4096 }
  0x16   : > { %p1018_p11 = scmp.ne.s32.totalorder (!%p148_p9), %s1358_s26, %s1017_s4 }
  0x17   : > { %s178_s6 = scalar_select %p177_p10, %s1195_s30, 63  ;;  %964 = vmatpush3.bf16.msra.mxu0 %v961_v5  ;;  %969 = vmatpush3.bf16.msra.mxu1 %v961_v5 }
  0x18   : > { %907 = vmatprep.subr.msk.mxu0 %vm317_vm1, %v219_v6  ;;  %967 = vmatprep.subr.msk.mxu1 %vm317_vm1, %v219_v6  ;;  %p1019_p12 = pnand %p1018_p11, %p1175_p5 }
  0x19   : > { %s820_s7 = sshll.u32 %s178_s6, 3  ;;  %s1021_s6 = sshll.u32 %s1113_s5, 4  ;;  %s1022_s6 = int_to_ptr.vmem [resolvable:$false] %s1021_s6 }
  0x1a   : > { %s1208_s17 = scalar_lea.vmem %s1489_s0, %s820_s7  ;;  %p1020_p13 = pneg %p1019_p12 }
  0x1b   : > { %v183_v7 = vld [vmem:[%s1208_s17] sm:$0xff]  ;;  %v184_v8 = vld [vmem:[%s1208_s17 + $0x8] sm:$0xff]  ;;  %v185_v9 = vld [vmem:[%s1208_s17 + $0x10] sm:$0xff]  ;;  %908 = vmatpush3.msk.msra.mxu0 %vm317_vm1, %v219_v6  ;;  %970 = vmatpush3.msk.msra.mxu1 %vm317_vm1, %v219_v6  ;;  %s1023_s7 = scalar_lea.vmem %s1022_s6, 8192  ;;  %p1024_p0 = scmp.lt.s32.totalorder %s1358_s26, %s1022_s6 }
  0x1c   : > { %909 = vmatprep.mubr.msk.f32.mxu0 %vm220_vm0, %v183_v7  ;;  %v199_v10 = vld [vmem:[%s1208_s17 + $0x80] sm:$0xff]  ;;  %v200_v11 = vld [vmem:[%s1208_s17 + $0x88] sm:$0xff]  ;;  %v201_v12 = vld [vmem:[%s1208_s17 + $0x90] sm:$0xff]  ;;  %p1025_p1 = scmp.lt.s32.totalorder %s1023_s7, %s1017_s4 }
  0x1d   : > { %910 = vmatmul.mubr.msk.f32.vlgmr.msra.gmra.mrb[0].mxu0 %vm220_vm0, %v184_v8  ;;  %v186_v13 = vld [vmem:[%s1208_s17 + $0x18] sm:$0xff]  ;;  %933 = vmatprep.mubr.msk.f32.mxu1 %vm220_vm0, %v199_v10  ;;  %v187_v14 = vld [vmem:[%s1208_s17 + $0x20] sm:$0xff]  ;;  %v188_v17 = vld [vmem:[%s1208_s17 + $0x28] sm:$0xff] }
  0x1e   : > { %912 = vmatprep.mubr.msk.f32.mxu0 %vm220_vm0, %v185_v9  ;;  %934 = vmatmul.mubr.msk.f32.vlgmr.msra.gmra.mrb[0].mxu1 %vm220_vm0, %v200_v11  ;;  %v202_v15 = vld [vmem:[%s1208_s17 + $0x98] sm:$0xff]  ;;  %v203_v16 = vld [vmem:[%s1208_s17 + $0xa0] sm:$0xff]  ;;  %v189_v18 = vld [vmem:[%s1208_s17 + $0x30] sm:$0xff]  ;;  %p1026_p2 = por %p1025_p1, %p1024_p0 }
  0x1f   : > { %936 = vmatprep.mubr.msk.f32.mxu1 %vm220_vm0, %v201_v12  ;;  %v204_v19 = vld [vmem:[%s1208_s17 + $0xa8] sm:$0xff]  ;;  %v205_v20 = vld [vmem:[%s1208_s17 + $0xb0] sm:$0xff]  ;;  %v190_v21 = vld [vmem:[%s1208_s17 + $0x38] sm:$0xff] }
  0x20   : > { %v191_v22 = vld [vmem:[%s1208_s17 + $0x40] sm:$0xff]  ;;  %v206_v23 = vld [vmem:[%s1208_s17 + $0xb8] sm:$0xff]  ;;  %v192_v25 = vld [vmem:[%s1208_s17 + $0x48] sm:$0xff]  ;;  %p1027_p3 = pnand %p1026_p2, %p1020_p13 }
  0x21   : > { %913 = vmatmul.mubr.msk.f32.gmra.mrb[2].mxu0 %vm220_vm0, %v186_v13  ;;  %v207_v24 = vld [vmem:[%s1208_s17 + $0xc0] sm:$0xff]  ;;  %v193_v26 = vld [vmem:[%s1208_s17 + $0x50] sm:$0xff]  ;;  %v208_v27 = vld [vmem:[%s1208_s17 + $0xc8] sm:$0xff] }
  0x22   : > { %915 = vmatprep.mubr.msk.f32.mxu0 %vm220_vm0, %v187_v14  ;;  %937 = vmatmul.mubr.msk.f32.gmra.mrb[2].mxu1 %vm220_vm0, %v202_v15  ;;  %v209_v28 = vld [vmem:[%s1208_s17 + $0xd0] sm:$0xff]  ;;  %v194_v29 = vld [vmem:[%s1208_s17 + $0x58] sm:$0xff]  ;;  %v195_v30 = vld [vmem:[%s1208_s17 + $0x60] sm:$0xff] }
  0x23   : > { %939 = vmatprep.mubr.msk.f32.mxu1 %vm220_vm0, %v203_v16  ;;  %v210_v31 = vld [vmem:[%s1208_s17 + $0xd8] sm:$0xff]  ;;  %v211_v32 = vld [vmem:[%s1208_s17 + $0xe0] sm:$0xff]  ;;  %v196_v33 = vld [vmem:[%s1208_s17 + $0x68] sm:$0xff] }
  0x24   : > { %v197_v34 = vld [vmem:[%s1208_s17 + $0x70] sm:$0xff]  ;;  %v212_v35 = vld [vmem:[%s1208_s17 + $0xe8] sm:$0xff]  ;;  %v198_v37 = vld [vmem:[%s1208_s17 + $0x78] sm:$0xff] }
  0x25   : > { %916 = vmatmul.mubr.msk.f32.gmra.mrb[4].mxu0 %vm220_vm0, %v188_v17  ;;  %v213_v36 = vld [vmem:[%s1208_s17 + $0xf0] sm:$0xff]  ;;  %v214_v38 = vld [vmem:[%s1208_s17 + $0xf8] sm:$0xff] }
  0x26   : > { %918 = vmatprep.mubr.msk.f32.mxu0 %vm220_vm0, %v189_v18  ;;  %940 = vmatmul.mubr.msk.f32.gmra.mrb[4].mxu1 %vm220_vm0, %v204_v19 }
  0x27   : > { %942 = vmatprep.mubr.msk.f32.mxu1 %vm220_vm0, %v205_v20 }
  0x29   : > { %919 = vmatmul.mubr.msk.f32.gmra.mrb[6].mxu0 %vm220_vm0, %v190_v21 }
  0x2a   : > { %921 = vmatprep.mubr.msk.f32.mxu0 %vm220_vm0, %v191_v22  ;;  %943 = vmatmul.mubr.msk.f32.gmra.mrb[6].mxu1 %vm220_vm0, %v206_v23 }
  0x2b   : > { %945 = vmatprep.mubr.msk.f32.mxu1 %vm220_vm0, %v207_v24 }
  0x2d   : > { %922 = vmatmul.mubr.msk.f32.gmra.mrb[8].mxu0 %vm220_vm0, %v192_v25 }
  0x2e   : > { %924 = vmatprep.mubr.msk.f32.mxu0 %vm220_vm0, %v193_v26  ;;  %946 = vmatmul.mubr.msk.f32.gmra.mrb[8].mxu1 %vm220_vm0, %v208_v27 }
  0x2f   : > { %948 = vmatprep.mubr.msk.f32.mxu1 %vm220_vm0, %v209_v28 }
  0x31   : > { %925 = vmatmul.mubr.msk.f32.gmra.mrb[10].mxu0 %vm220_vm0, %v194_v29 }
  0x32   : > { %927 = vmatprep.mubr.msk.f32.mxu0 %vm220_vm0, %v195_v30  ;;  %949 = vmatmul.mubr.msk.f32.gmra.mrb[10].mxu1 %vm220_vm0, %v210_v31 }
  0x33   : > { %951 = vmatprep.mubr.msk.f32.mxu1 %vm220_vm0, %v211_v32 }
  0x35   : > { %928 = vmatmul.mubr.msk.f32.gmra.mrb[12].mxu0 %vm220_vm0, %v196_v33 }
  0x36   : > { %930 = vmatprep.mubr.msk.f32.mxu0 %vm220_vm0, %v197_v34  ;;  %952 = vmatmul.mubr.msk.f32.gmra.mrb[12].mxu1 %vm220_vm0, %v212_v35 }
  0x37   : > { %954 = vmatprep.mubr.msk.f32.mxu1 %vm220_vm0, %v213_v36 }
  0x39   : > { %931 = vmatmul.mubr.msk.f32.gmra.mrb[14].mxu0 %vm220_vm0, %v198_v37 }
  0x3a   : > { %955 = vmatmul.mubr.msk.f32.gmra.mrb[14].mxu1 %vm220_vm0, %v214_v38 }
  0xf0   : > { %v911_v39 = vpop.f32.mrb[0].mxu0 }
  0xf1   : > { %547 = vst [vmem:[%s1278_s24 + $0x8] sm:$0xff] %v911_v39  ;;  %v616_v40 = vmul.f32 %v911_v39, %v911_v39  ;;  %v387_v41 = vpop.f32.mrb[1].mxu0  ;;  %v1282_v44 = vpop.f32.mrb[0].mxu1 }
  0xf2   : > { %546 = vst [vmem:[%s1278_s24] sm:$0xff] %v387_v41  ;;  %v578_v42 = vadd.f32 %v911_v39, %v387_v41  ;;  %v615_v43 = vmul.f32 %v387_v41, %v387_v41  ;;  %563 = vst [vmem:[%s1278_s24 + $0x88] sm:$0xff] %v1282_v44  ;;  %v1286_v45 = vpop.f32.mrb[1].mxu1 }
  0xf3   : > { %562 = vst [vmem:[%s1278_s24 + $0x80] sm:$0xff] %v1286_v45 }
  0xf4   : > { %v647_v46 = vadd.f32 %v616_v40, %v615_v43  ;;  %v914_v47 = vpop.f32.mrb[2].mxu0 }
  0xf5   : > { %549 = vst [vmem:[%s1278_s24 + $0x18] sm:$0xff] %v914_v47  ;;  %v397_v48 = vpop.f32.mrb[3].mxu0  ;;  %v1292_v51 = vpop.f32.mrb[2].mxu1  ;;  %v618_v53 = vmul.f32 %v914_v47, %v914_v47 }
  0xf6   : > { %548 = vst [vmem:[%s1278_s24 + $0x10] sm:$0xff] %v397_v48  ;;  %v579_v49 = vadd.f32 %v578_v42, %v397_v48  ;;  %v617_v50 = vmul.f32 %v397_v48, %v397_v48  ;;  %565 = vst [vmem:[%s1278_s24 + $0x98] sm:$0xff] %v1292_v51  ;;  %v1296_v52 = vpop.f32.mrb[3].mxu1 }
  0xf7   : > { %564 = vst [vmem:[%s1278_s24 + $0x90] sm:$0xff] %v1296_v52 }
  0xf8   : > { %v648_v54 = vadd.f32 %v647_v46, %v617_v50  ;;  %v917_v55 = vpop.f32.mrb[4].mxu0  ;;  %v580_v56 = vadd.f32 %v914_v47, %v579_v49 }
  0xf9   : > { %551 = vst [vmem:[%s1278_s24 + $0x28] sm:$0xff] %v917_v55  ;;  %v407_v57 = vpop.f32.mrb[5].mxu0  ;;  %v1302_v61 = vpop.f32.mrb[4].mxu1  ;;  %v620_v63 = vmul.f32 %v917_v55, %v917_v55 }
  0xfa   : > { %550 = vst [vmem:[%s1278_s24 + $0x20] sm:$0xff] %v407_v57  ;;  %v581_v58 = vadd.f32 %v580_v56, %v407_v57  ;;  %v619_v59 = vmul.f32 %v407_v57, %v407_v57  ;;  %v649_v60 = vadd.f32 %v648_v54, %v618_v53  ;;  %567 = vst [vmem:[%s1278_s24 + $0xa8] sm:$0xff] %v1302_v61  ;;  %v1306_v62 = vpop.f32.mrb[5].mxu1 }
  0xfb   : > { %566 = vst [vmem:[%s1278_s24 + $0xa0] sm:$0xff] %v1306_v62  ;;  %v631_v56 = vmul.f32 %v1286_v45, %v1286_v45 }
  0xfc   : > { %v650_v0 = vadd.f32 %v649_v60, %v619_v59  ;;  %v920_v1 = vpop.f32.mrb[6].mxu0  ;;  %v582_v2 = vadd.f32 %v917_v55, %v581_v58 }
  0xfd   : > { %553 = vst [vmem:[%s1278_s24 + $0x38] sm:$0xff] %v920_v1  ;;  %v417_v3 = vpop.f32.mrb[7].mxu0  ;;  %v1312_v7 = vpop.f32.mrb[6].mxu1  ;;  %v622_v9 = vmul.f32 %v920_v1, %v920_v1 }
  0xfe   : > { %552 = vst [vmem:[%s1278_s24 + $0x30] sm:$0xff] %v417_v3  ;;  %v583_v4 = vadd.f32 %v582_v2, %v417_v3  ;;  %v621_v5 = vmul.f32 %v417_v3, %v417_v3  ;;  %v651_v6 = vadd.f32 %v650_v0, %v620_v63  ;;  %569 = vst [vmem:[%s1278_s24 + $0xb8] sm:$0xff] %v1312_v7  ;;  %v1316_v8 = vpop.f32.mrb[7].mxu1 }
  0xff   : > { %568 = vst [vmem:[%s1278_s24 + $0xb0] sm:$0xff] %v1316_v8 }
 0x100   : > { %v652_v10 = vadd.f32 %v651_v6, %v621_v5  ;;  %v923_v11 = vpop.f32.mrb[8].mxu0  ;;  %v584_v12 = vadd.f32 %v920_v1, %v583_v4 }
 0x101   : > { %555 = vst [vmem:[%s1278_s24 + $0x48] sm:$0xff] %v923_v11  ;;  %v427_v13 = vpop.f32.mrb[9].mxu0  ;;  %v1322_v17 = vpop.f32.mrb[8].mxu1  ;;  %v624_v19 = vmul.f32 %v923_v11, %v923_v11 }
 0x102   : > { %554 = vst [vmem:[%s1278_s24 + $0x40] sm:$0xff] %v427_v13  ;;  %v585_v14 = vadd.f32 %v584_v12, %v427_v13  ;;  %v623_v15 = vmul.f32 %v427_v13, %v427_v13  ;;  %v653_v16 = vadd.f32 %v652_v10, %v622_v9  ;;  %571 = vst [vmem:[%s1278_s24 + $0xc8] sm:$0xff] %v1322_v17  ;;  %v1326_v18 = vpop.f32.mrb[9].mxu1 }
 0x103   : > { %570 = vst [vmem:[%s1278_s24 + $0xc0] sm:$0xff] %v1326_v18 }
 0x104   : > { %v654_v20 = vadd.f32 %v653_v16, %v623_v15  ;;  %v926_v21 = vpop.f32.mrb[10].mxu0  ;;  %v586_v22 = vadd.f32 %v923_v11, %v585_v14 }
 0x105   : > { %557 = vst [vmem:[%s1278_s24 + $0x58] sm:$0xff] %v926_v21  ;;  %v437_v23 = vpop.f32.mrb[11].mxu0  ;;  %v1332_v27 = vpop.f32.mrb[10].mxu1  ;;  %v626_v29 = vmul.f32 %v926_v21, %v926_v21 }
 0x106   : > { %556 = vst [vmem:[%s1278_s24 + $0x50] sm:$0xff] %v437_v23  ;;  %v587_v24 = vadd.f32 %v586_v22, %v437_v23  ;;  %v625_v25 = vmul.f32 %v437_v23, %v437_v23  ;;  %v655_v26 = vadd.f32 %v654_v20, %v624_v19  ;;  %573 = vst [vmem:[%s1278_s24 + $0xd8] sm:$0xff] %v1332_v27  ;;  %v1336_v28 = vpop.f32.mrb[11].mxu1 }
 0x107   : > { %572 = vst [vmem:[%s1278_s24 + $0xd0] sm:$0xff] %v1336_v28 }
 0x108   : > { %v656_v30 = vadd.f32 %v655_v26, %v625_v25  ;;  %v929_v31 = vpop.f32.mrb[12].mxu0  ;;  %v588_v32 = vadd.f32 %v926_v21, %v587_v24 }
 0x109   : > { %559 = vst [vmem:[%s1278_s24 + $0x68] sm:$0xff] %v929_v31  ;;  %v447_v33 = vpop.f32.mrb[13].mxu0  ;;  %v1342_v37 = vpop.f32.mrb[12].mxu1  ;;  %v628_v39 = vmul.f32 %v929_v31, %v929_v31 }
 0x10a   : > { %558 = vst [vmem:[%s1278_s24 + $0x60] sm:$0xff] %v447_v33  ;;  %v589_v34 = vadd.f32 %v588_v32, %v447_v33  ;;  %v627_v35 = vmul.f32 %v447_v33, %v447_v33  ;;  %v657_v36 = vadd.f32 %v656_v30, %v626_v29  ;;  %575 = vst [vmem:[%s1278_s24 + $0xe8] sm:$0xff] %v1342_v37  ;;  %v1348_v38 = vpop.f32.mrb[13].mxu1 }
 0x10b   : > { %574 = vst [vmem:[%s1278_s24 + $0xe0] sm:$0xff] %v1348_v38 }
 0x10c   : > { %v658_v40 = vadd.f32 %v657_v36, %v627_v35  ;;  %v932_v41 = vpop.f32.mrb[14].mxu0  ;;  %v590_v42 = vadd.f32 %v929_v31, %v589_v34 }
 0x10d   : > { %561 = vst [vmem:[%s1278_s24 + $0x78] sm:$0xff] %v932_v41  ;;  %v457_v43 = vpop.f32.mrb[15].mxu0  ;;  %v1361_v49 = vpop.f32.mrb[14].mxu1  ;;  %v630_v53 = vmul.f32 %v932_v41, %v932_v41 }
 0x10e   : > { %560 = vst [vmem:[%s1278_s24 + $0x70] sm:$0xff] %v457_v43  ;;  %v591_v46 = vadd.f32 %v590_v42, %v457_v43  ;;  %v629_v47 = vmul.f32 %v457_v43, %v457_v43  ;;  %v659_v48 = vadd.f32 %v658_v40, %v628_v39  ;;  %577 = vst [vmem:[%s1278_s24 + $0xf8] sm:$0xff] %v1361_v49  ;;  %v1365_v50 = vpop.f32.mrb[15].mxu1 }
 0x10f   : > { %576 = vst [vmem:[%s1278_s24 + $0xf0] sm:$0xff] %v1365_v50 }
 0x110   : > { %v592_v54 = vadd.f32 %v932_v41, %v591_v46  ;;  %v660_v55 = vadd.f32 %v659_v48, %v629_v47 }
 0x111   : > { %1030 = shalt.err (!%p1027_p3)
}
 0x112   : > { %s1031_s8 = scalar_lea.hbm %s1356_s16, 4096  ;;  %s1035_s11 = scalar_lea.hbm %s1491_s2, 8192 }
 0x113   : > { %p1032_p4 = scmp.ne.s32.totalorder %s1356_s16, %s1031_s8  ;;  %p1036_p9 = scmp.lt.u32.totalorder %s1356_s16, %s1491_s2 }
 0x114   : > { %p1037_p10 = scmp.lt.u32.totalorder %s1035_s11, %s1031_s8  ;;  %p1039_p12 = scmp.lt.u32.totalorder %s1031_s8, %s1356_s16 }
 0x115   : > { %p1033_p7 = pnand %p1032_p4, %p1175_p5 }
 0x116   : > { %p1038_p11 = por %p1037_p10, %p1036_p9 }
 0x117   : > { %p1034_p8 = pneg %p1033_p7 }
 0x118   : > { %p1040_p13 = por %p1039_p12, %p1038_p11 }
 0x11a   : > { %p1041_p0 = pnand %p1040_p13, %p1034_p8 }
 0x11c   : > { %1044 = shalt.err (!%p1041_p0)
}
 0x11d   : > { %s1114_s24 = smov 128   ;;  %s1115_s25 = smov 8   ;;  %v661_v57 = vadd.f32 %v660_v55, %v630_v53  ;;  %v593_v58 = vadd.f32 %v592_v54, %v1286_v45  ;;  %v632_v59 = vmul.f32 %v1282_v44, %v1282_v44  ;;  %v633_v0 = vmul.f32 %v1296_v52, %v1296_v52 }
 0x11e   : > { %971 = dma.vmem_to_hbm [thread:$0]  (%p1175_p5), %s1358_s26, 4096, %s1356_s16, %s688_s29, %s1114_s24, %s1114_s24, %s1115_s25   ;;  %v634_v3 = vmul.f32 %v1292_v51, %v1292_v51  ;;  %v635_v45 = vmul.f32 %v1306_v62, %v1306_v62  ;;  %v645_v31 = vmul.f32 %v1365_v50, %v1365_v50  ;;  %vm684_vm2 = vcmask 1040384  }
 0x11f   : > { %v662_v60 = vadd.f32 %v661_v57, %v631_v56  ;;  %v594_v63 = vadd.f32 %v1282_v44, %v593_v58  ;;  %v636_v44 = vmul.f32 %v1302_v61, %v1302_v61  ;;  %s818_s26 = sshll.u32 %s1275_s19, 1  ;;  %s1446_s4 = scalar_lea.hbm %s1492_s3, %s1195_s30 }
 0x120   : > { %s175_s27 = scalar_lea.vmem [#allocation4], %s818_s26  ;;  %s693_s5 = scalar_lea.sflag [#allocation5], %s1275_s19 }
 0x121   : > { %v595_v1 = vadd.f32 %v594_v63, %v1296_v52  ;;  %v663_v2 = vadd.f32 %v662_v60, %v632_v59  ;;  %v637_v52 = vmul.f32 %v1316_v8, %v1316_v8  ;;  %s722_s28 = sshll.u32 %s175_s27, 4  ;;  %s1116_s7 = smov [#allocation4]   ;;  %s1448_s28 = int_to_ptr.vmem [resolvable:$true] %s722_s28 }
 0x122   : > { %s1045_s6 = scalar_lea.vmem %s1448_s28, 32  ;;  %s1049_s8 = sshll.u32 %s1116_s7, 4  ;;  %s1050_s8 = int_to_ptr.vmem [resolvable:$false] %s1049_s8 }
 0x123   : > { %v664_v4 = vadd.f32 %v663_v2, %v633_v0  ;;  %v596_v5 = vadd.f32 %v1292_v51, %v595_v1  ;;  %v638_v51 = vmul.f32 %v1312_v7, %v1312_v7  ;;  %p1046_p1 = scmp.ne.s32.totalorder %s1448_s28, %s1045_s6  ;;  %s1051_s9 = scalar_lea.vmem %s1050_s8, 64 }
 0x124   : > { %p1052_p4 = scmp.lt.s32.totalorder %s1448_s28, %s1050_s8  ;;  %p1053_p7 = scmp.lt.s32.totalorder %s1051_s9, %s1045_s6 }
 0x125   : > { %v597_v6 = vadd.f32 %v596_v5, %v1306_v62  ;;  %v665_v9 = vadd.f32 %v664_v4, %v634_v3  ;;  %v639_v62 = vmul.f32 %v1326_v18, %v1326_v18  ;;  %p1047_p2 = pnand %p1046_p1, %p1175_p5 }
 0x126   : > { %p1054_p8 = por %p1053_p7, %p1052_p4 }
 0x127   : > { %v666_v10 = vadd.f32 %v665_v9, %v635_v45  ;;  %v598_v11 = vadd.f32 %v1302_v61, %v597_v6  ;;  %v640_v61 = vmul.f32 %v1322_v17, %v1322_v17  ;;  %p1048_p3 = pneg %p1047_p2 }
 0x129   : > { %v599_v12 = vadd.f32 %v598_v11, %v1316_v8  ;;  %v667_v13 = vadd.f32 %v666_v10, %v636_v44  ;;  %v641_v8 = vmul.f32 %v1336_v28, %v1336_v28  ;;  %p1055_p9 = pnand %p1054_p8, %p1048_p3 }
 0x12b   : > { %v668_v14 = vadd.f32 %v667_v13, %v637_v52  ;;  %v600_v15 = vadd.f32 %v1312_v7, %v599_v12  ;;  %v642_v7 = vmul.f32 %v1332_v27, %v1332_v27 }
 0x12d   : > { %v601_v16 = vadd.f32 %v600_v15, %v1326_v18  ;;  %v669_v19 = vadd.f32 %v668_v14, %v638_v51  ;;  %v643_v18 = vmul.f32 %v1348_v38, %v1348_v38 }
 0x12f   : > { %v670_v20 = vadd.f32 %v669_v19, %v639_v62  ;;  %v602_v21 = vadd.f32 %v1322_v17, %v601_v16  ;;  %v644_v17 = vmul.f32 %v1342_v37, %v1342_v37 }
 0x131   : > { %v603_v22 = vadd.f32 %v602_v21, %v1336_v28  ;;  %v671_v23 = vadd.f32 %v670_v20, %v640_v61 }
 0x133   : > { %v672_v24 = vadd.f32 %v671_v23, %v641_v8  ;;  %v604_v25 = vadd.f32 %v1332_v27, %v603_v22  ;;  %v646_v27 = vmul.f32 %v1361_v49, %v1361_v49 }
 0x135   : > { %v605_v26 = vadd.f32 %v604_v25, %v1348_v38  ;;  %v673_v29 = vadd.f32 %v672_v24, %v642_v7 }
 0x137   : > { %v674_v30 = vadd.f32 %v673_v29, %v643_v18  ;;  %v606_v28 = vadd.f32 %v1342_v37, %v605_v26 }
 0x139   : > { %v607_v32 = vadd.f32 %v606_v28, %v1365_v50  ;;  %v675_v33 = vadd.f32 %v674_v30, %v644_v17 }
 0x13b   : > { %v608_v34 = vadd.f32 %v1361_v49, %v607_v32  ;;  %v676_v35 = vadd.f32 %v675_v33, %v645_v31 }
 0x13d   : > { %v609_v36 = vrot.slane %v608_v34, 4  ;;  %v677_v38 = vadd.f32 %v676_v35, %v646_v27 }
 0x13f   : > { %v610_v39 = vadd.f32 %v609_v36, %v608_v34  ;;  %v678_v40 = vrot.slane %v677_v38, 4 }
 0x141   : > { %v611_v41 = vrot.slane %v610_v39, 2  ;;  %v679_v42 = vadd.f32 %v678_v40, %v677_v38 }
 0x143   : > { %v612_v37 = vadd.f32 %v611_v41, %v610_v39  ;;  %v680_v43 = vrot.slane %v679_v42, 2 }
 0x145   : > { %v613_v46 = vrot.slane %v612_v37, 1  ;;  %v681_v47 = vadd.f32 %v680_v43, %v679_v42 }
 0x147   : > { %v682_v48 = vrot.slane %v681_v47, 1  ;;  %v614_v49 = vadd.f32 %v613_v46, %v612_v37 }
 0x149   : > { %v683_v50 = vadd.f32 %v682_v48, %v681_v47 }
 0x14b   : > { %v685_v53 = vsel %vm684_vm2, %v614_v49, %v683_v50 }
 0x14c   : > { %686 = vst [vmem:[%s175_s27] sm:$0x3] %v685_v53 }
 0x14d   : > { %1058 = shalt.err (!%p1055_p9)
}
 0x14e   : > { %s1059_s30 = scalar_lea.hbm %s1446_s4, 32  ;;  %s1063_s11 = scalar_lea.hbm %s1492_s3, 64 }
 0x14f   : > { %p1060_p10 = scmp.ne.s32.totalorder %s1446_s4, %s1059_s30  ;;  %p1064_p13 = scmp.lt.u32.totalorder %s1446_s4, %s1492_s3 }
 0x150   : > { %p1065_p0 = scmp.lt.u32.totalorder %s1063_s11, %s1059_s30  ;;  %p1067_p2 = scmp.lt.u32.totalorder %s1059_s30, %s1446_s4 }
 0x151   : > { %p1061_p11 = pnand %p1060_p10, %p1175_p5 }
 0x152   : > { %p1066_p1 = por %p1065_p0, %p1064_p13 }
 0x153   : > { %p1062_p12 = pneg %p1061_p11 }
 0x154   : > { %p1068_p3 = por %p1067_p2, %p1066_p1 }
 0x156   : > { %p1069_p4 = pnand %p1068_p3, %p1062_p12 }
 0x158   : > { %1072 = shalt.err (!%p1069_p4)
}
 0x159   : > { %972 = dma.vmem_to_hbm [thread:$0]  (%p1175_p5), %s1448_s28, 32, %s1446_s4, %s693_s5  }
 0x15a PF: > { %p982_p7 = scmp.ge.s32.totalorder %s1111_s15, 2  ;;  %s734_s24 = sand.u32 1, %s1099_s12  }
 0x15b   : > { %s735_s25 = scalar_lea.sflag [#allocation3], %s734_s24 }
 0x15c   : > { %p976_p8 = pnand %p982_p7, %p1179_p6 }
 0x15e   : > { %1090 = dma.done.wait (!%p976_p8), %s735_s25, 4096  }
 0x15f   : > { %1092 = vsyncadd (!%p976_p8), %s735_s25, 4294963200  ;;  %s744_s26 = scalar_lea.sflag [#allocation5], %s734_s24 }
 0x160   : > { %1094 = dma.done.wait (!%p976_p8), %s744_s26, 32  }
 0x161   : > { %1096 = vsyncadd (!%p976_p8), %s744_s26, 4294967264  ;;  %p17_p5 = scmp.ge.s32.totalorder %s1162_s18, 4   ;;  %s1495_s12 = smov %s1103_s13 }
 0x162   : > { %s1496_s13 = smov %s1107_s14  ;;  %s1497_s14 = smov %s1173_s21 }
 0x163   : > { %s1498_s15 = smov %s1162_s18  ;;  %19 = sbr.rel (!%p17_p5) target bundleno = 5 (0x5), region = 80 }
 0x16a   :  { %749 = vsyncpa [#allocation3], 1 }
 0x16b   :  { %751 = vsyncpa [#allocation3 + $0x1], 1 }
 0x16c   :  { %752 = vsyncpa [#allocation5], 1 }
 0x16d   :  { %754 = vsyncpa [#allocation5 + $0x1], 1 }

</bundles_post_ra>
